<compile_context>
chip_gen: v7x
topology: tpu7x:2x2x1
jax: 0.10.0
libtpu: 0.0.40
codegen_flags: <defaults>
</compile_context>

<pallas_src>
import math

import jax
import jax.numpy as jnp
from jax import lax
from jax.experimental import pallas as pl
from jax.experimental.pallas import tpu as pltpu

BN_EPS = 1e-5


def _gcn_cell_kernel(
    x_ref, ecat_ref, estart_ref, eendt_ref, invdeg_ref,
    w1_ref, bu1_ref, bv1_ref,
    w2_ref, bu2_ref, bv2_ref,
    g1_ref, beta1_ref, g2_ref, beta2_ref,
    out_ref,
):
    f32 = jnp.float32
    x = x_ref[...]                      # [V, din]
    E_cat = ecat_ref[...]               # [E, 2V]  = [E_end | E_start]
    E_start = estart_ref[...]           # [E, V]
    E_end_T = eendt_ref[...]            # [V, E]
    inv_indeg = invdeg_ref[...]         # [V, 1]

    V = x.shape[0]
    D = out_ref.shape[1]
    inv_v = 1.0 / float(V)

    def mm(a, b):
        return jnp.dot(a, b, preferred_element_type=f32)

    # Hoisted once: ones row used for MXU-based batch-norm reductions.
    ones_row = jnp.ones((1, V), f32)

    def gated_layer(P, bu, bv):
        # P = h @ [Ui | Uj | Vi | Vj | ...]  -> slice the 4 D-wide projections.
        Uix = P[:, 0:D]
        Ujx = P[:, D:2 * D]
        Vix = P[:, 2 * D:3 * D]
        Vjx = P[:, 3 * D:4 * D]
        # E_end@Vix + E_start@Vjx fused into one matmul via E_cat @ [Vix; Vjx].
        v_stack = jnp.concatenate([Vix, Vjx], axis=0)          # [2V, D]
        x1 = jax.nn.sigmoid(mm(E_cat, v_stack) + bv)           # [E, D]
        x2 = mm(E_start, Ujx)                                  # [E, D]
        agg = x1 * x2                                          # [E, D]
        sum_xj = mm(E_end_T, agg) * inv_indeg                  # [V, D]
        return Uix + sum_xj + bu

    def batch_norm(h, gamma, beta):
        # Training-mode BatchNorm1d forward, biased batch statistics.
        # Single MXU pass over [h | h*h] gives sum(h) and sum(h^2).
        hs = jnp.concatenate([h, h * h], axis=1)               # [V, 2D]
        s = mm(ones_row, hs) * inv_v                           # [1, 2D]
        mean = s[:, 0:D]
        ex2 = s[:, D:2 * D]
        var = jnp.maximum(ex2 - mean * mean, 0.0)              # clamp round-off
        return (h - mean) * lax.rsqrt(var + BN_EPS) * gamma + beta

    # ---- layer 1 (fused projection also carries the residual slice R@x) ----
    P1 = mm(x, w1_ref[...])                                    # [V, 5D]
    res = P1[:, 4 * D:5 * D]                                   # R @ x
    h = gated_layer(P1, bu1_ref[...], bv1_ref[...])
    h = jnp.maximum(batch_norm(h, g1_ref[...], beta1_ref[...]), 0.0)

    # ---- layer 2 + residual ----
    P2 = mm(h, w2_ref[...])                                    # [V, 4D]
    h = gated_layer(P2, bu2_ref[...], bv2_ref[...])
    h = batch_norm(h, g2_ref[...], beta2_ref[...]) + res
    out_ref[...] = jnp.maximum(h, 0.0).astype(out_ref.dtype)


def graph_convnet_cell(x, E_start, E_end, params):
    V, din = x.shape
    E = E_start.shape[0]
    dout = params["Ui1"].shape[1]

    # Host-side fusions / precomputation (cheap relative to the custom call).
    W1 = jnp.concatenate(
        [params["Ui1"], params["Uj1"], params["Vi1"], params["Vj1"], params["R"]],
        axis=1)                                                # [din, 5*dout]
    W2 = jnp.concatenate(
        [params["Ui2"], params["Uj2"], params["Vi2"], params["Vj2"]],
        axis=1)                                                # [dout, 4*dout]
    E_cat = jnp.concatenate([E_end, E_start], axis=1)          # [E, 2V]
    E_end_T = E_end.T                                          # [V, E]
    indeg = jnp.sum(E_end, axis=0)
    inv_indeg = (1.0 / jnp.where(indeg == 0.0, 1.0, indeg))[:, None]  # [V, 1]

    inputs = (
        x, E_cat, E_start, E_end_T, inv_indeg,
        W1, params["bu1"], params["bv1"],
        W2, params["bu2"], params["bv2"],
        params["g1"], params["b1"], params["g2"], params["b2"],
    )
    n_in = len(inputs)
    vmem_spec = pl.BlockSpec(memory_space=pltpu.MemorySpace.VMEM)

    # Advisory cost estimate for XLA scheduling.
    flops = 2 * (
        V * din * 5 * dout               # fused layer-1 projection (+R)
        + V * dout * 4 * dout            # fused layer-2 projection
        + 2 * (E * 2 * V * dout)         # fused E_cat matmuls (both layers)
        + 2 * (E * V * dout)             # E_start @ Ujx (both layers)
        + 2 * (V * E * dout)             # E_end_T aggregation (both layers)
        + 2 * (V * 2 * dout)             # BN reduction matmuls
    )
    in_bytes = 4 * (sum(int(a.size) for a in inputs) + V * dout)
    cost = pl.CostEstimate(
        flops=int(flops),
        transcendentals=int(2 * E * dout),
        bytes_accessed=int(in_bytes),
    )
    vmem_limit = int(min(48 * 2**20, max(16 * 2**20, 8 * in_bytes)))

    return pl.pallas_call(
        _gcn_cell_kernel,
        out_shape=jax.ShapeDtypeStruct((V, dout), jnp.float32),
        in_specs=[vmem_spec] * n_in,
        out_specs=vmem_spec,
        cost_estimate=cost,
        compiler_params=pltpu.CompilerParams(vmem_limit_bytes=vmem_limit),
    )(*inputs)


def _reference(x, E_start, E_end, p):
    """Plain-JAX mirror of the PyTorch forward (for verification)."""
    indeg = jnp.sum(E_end, axis=0)
    indeg = jnp.where(indeg == 0.0, 1.0, indeg)

    def layer(h, Ui, Uj, Vi, Vj, bu, bv):
        Vix, Vjx = h @ Vi, h @ Vj
        x1 = jax.nn.sigmoid(E_end @ Vix + E_start @ Vjx + bv)
        x2 = E_start @ (h @ Uj)
        Uix = h @ Ui
        sum_xj = (E_end.T @ (x1 * x2)) / indeg[:, None]
        return Uix + sum_xj + bu

    def bn(h, g, b):
        mean = jnp.mean(h, axis=0, keepdims=True)
        var = jnp.mean((h - mean) ** 2, axis=0, keepdims=True)
        return (h - mean) / jnp.sqrt(var + BN_EPS) * g + b

    h = jax.nn.relu(bn(layer(x, p["Ui1"], p["Uj1"], p["Vi1"], p["Vj1"],
                             p["bu1"], p["bv1"]), p["g1"], p["b1"]))
    h = bn(layer(h, p["Ui2"], p["Uj2"], p["Vi2"], p["Vj2"],
                 p["bu2"], p["bv2"]), p["g2"], p["b2"]) + x @ p["R"]
    return jax.nn.relu(h)


def init_params(key, dim_in, dim_out):
    ks = jax.random.split(key, 9)
    s_in = math.sqrt(2.0 / dim_in)
    s_out = math.sqrt(2.0 / dim_out)

    def u(k, shape, scale):
        return jax.random.uniform(k, shape, jnp.float32, -scale, scale)

    zeros = jnp.zeros((1, dim_out), jnp.float32)
    ones = jnp.ones((1, dim_out), jnp.float32)
    return {
        # Linear weights stored transposed: [in, out]
        "Ui1": u(ks[0], (dim_in, dim_out), s_in),
        "Uj1": u(ks[1], (dim_in, dim_out), s_in),
        "Vi1": u(ks[2], (dim_in, dim_out), s_in),
        "Vj1": u(ks[3], (dim_in, dim_out), s_in),
        "bu1": zeros, "bv1": zeros,
        "Ui2": u(ks[4], (dim_out, dim_out), s_out),
        "Uj2": u(ks[5], (dim_out, dim_out), s_out),
        "Vi2": u(ks[6], (dim_out, dim_out), s_out),
        "Vj2": u(ks[7], (dim_out, dim_out), s_out),
        "bu2": zeros, "bv2": zeros,
        "g1": ones, "b1": zeros,   # bn1 gamma/beta (default init)
        "g2": ones, "b2": zeros,   # bn2 gamma/beta
        "R": u(ks[8], (dim_in, dim_out), s_in),
    }


if __name__ == "__main__":
    V, E, dim_in, dim_out = 16, 48, 8, 32
    key = jax.random.PRNGKey(0)
    k_x, k_src, k_dst, k_p = jax.random.split(key, 4)

    x = jax.random.normal(k_x, (V, dim_in), jnp.float32)
    src = jax.random.randint(k_src, (E,), 0, V)
    dst = jax.random.randint(k_dst, (E,), 0, V)
    E_start = jax.nn.one_hot(src, V, dtype=jnp.float32)   # [E, V]
    E_end = jax.nn.one_hot(dst, V, dtype=jnp.float32)     # [E, V]

    params = init_params(k_p, dim_in, dim_out)

    out = graph_convnet_cell(x, E_start, E_end, params)
    out = jax.block_until_ready(out)

    ref = _reference(x, E_start, E_end, params)
    assert out.shape == (V, dim_out)
    assert jnp.allclose(out, ref, rtol=1e-3, atol=1e-3), "mismatch vs reference"

    print("KERNEL_OK")
</pallas_src>

<mosaic_0001>
module attributes {stable_mosaic.version = 11 : i64} {
  func.func @_gcn_cell_kernel(%arg0: memref<16x8xf32, #tpu.memory_space<vmem>>, %arg1: memref<48x32xf32, #tpu.memory_space<vmem>>, %arg2: memref<48x16xf32, #tpu.memory_space<vmem>>, %arg3: memref<16x48xf32, #tpu.memory_space<vmem>>, %arg4: memref<16x1xf32, #tpu.memory_space<vmem>>, %arg5: memref<8x160xf32, #tpu.memory_space<vmem>>, %arg6: memref<1x32xf32, #tpu.memory_space<vmem>>, %arg7: memref<1x32xf32, #tpu.memory_space<vmem>>, %arg8: memref<32x128xf32, #tpu.memory_space<vmem>>, %arg9: memref<1x32xf32, #tpu.memory_space<vmem>>, %arg10: memref<1x32xf32, #tpu.memory_space<vmem>>, %arg11: memref<1x32xf32, #tpu.memory_space<vmem>>, %arg12: memref<1x32xf32, #tpu.memory_space<vmem>>, %arg13: memref<1x32xf32, #tpu.memory_space<vmem>>, %arg14: memref<1x32xf32, #tpu.memory_space<vmem>>, %arg15: memref<16x32xf32, #tpu.memory_space<vmem>>) attributes {dimension_semantics = [], scalar_prefetch = 0 : i64, scratch_operands = 0 : i64, tpu.core_type = #tpu.core_type<tc>} {
    %c0 = arith.constant 0 : index
    %c0_0 = arith.constant 0 : index
    %0 = vector.load %arg0[%c0, %c0_0] : memref<16x8xf32, #tpu.memory_space<vmem>>, vector<16x8xf32>
    %c0_1 = arith.constant 0 : index
    %c0_2 = arith.constant 0 : index
    %1 = vector.load %arg1[%c0_1, %c0_2] : memref<48x32xf32, #tpu.memory_space<vmem>>, vector<48x32xf32>
    %c0_3 = arith.constant 0 : index
    %c0_4 = arith.constant 0 : index
    %2 = vector.load %arg2[%c0_3, %c0_4] : memref<48x16xf32, #tpu.memory_space<vmem>>, vector<48x16xf32>
    %c0_5 = arith.constant 0 : index
    %c0_6 = arith.constant 0 : index
    %3 = vector.load %arg3[%c0_5, %c0_6] : memref<16x48xf32, #tpu.memory_space<vmem>>, vector<16x48xf32>
    %c0_7 = arith.constant 0 : index
    %c0_8 = arith.constant 0 : index
    %4 = vector.load %arg4[%c0_7, %c0_8] : memref<16x1xf32, #tpu.memory_space<vmem>>, vector<16x1xf32>
    %cst = arith.constant 1.000000e+00 : f32
    %5 = vector.broadcast %cst : f32 to vector<1x16xf32>
    %c0_9 = arith.constant 0 : index
    %c0_10 = arith.constant 0 : index
    %6 = vector.load %arg5[%c0_9, %c0_10] : memref<8x160xf32, #tpu.memory_space<vmem>>, vector<8x160xf32>
    %cst_11 = arith.constant dense<0.000000e+00> : vector<16x160xf32>
    %7 = tpu.matmul %0, %6, %cst_11 {dimension_numbers = #tpu.dot_dimension_numbers<[1], [0], [0], [1], [0, 0, 1, 1], [], []>} : vector<16x8xf32>, vector<8x160xf32>, vector<16x160xf32> -> vector<16x160xf32>
    %8 = vector.extract_strided_slice %7 {offsets = [0, 128], sizes = [16, 32], strides = [1, 1]} : vector<16x160xf32> to vector<16x32xf32>
    %c0_12 = arith.constant 0 : index
    %c0_13 = arith.constant 0 : index
    %9 = vector.load %arg6[%c0_12, %c0_13] : memref<1x32xf32, #tpu.memory_space<vmem>>, vector<1x32xf32>
    %c0_14 = arith.constant 0 : index
    %c0_15 = arith.constant 0 : index
    %10 = vector.load %arg7[%c0_14, %c0_15] : memref<1x32xf32, #tpu.memory_space<vmem>>, vector<1x32xf32>
    %11 = vector.extract_strided_slice %7 {offsets = [0, 0], sizes = [16, 32], strides = [1, 1]} : vector<16x160xf32> to vector<16x32xf32>
    %12 = vector.extract_strided_slice %7 {offsets = [0, 32], sizes = [16, 32], strides = [1, 1]} : vector<16x160xf32> to vector<16x32xf32>
    %13 = vector.extract_strided_slice %7 {offsets = [0, 64], sizes = [16, 32], strides = [1, 1]} : vector<16x160xf32> to vector<16x32xf32>
    %14 = vector.extract_strided_slice %7 {offsets = [0, 96], sizes = [16, 32], strides = [1, 1]} : vector<16x160xf32> to vector<16x32xf32>
    %15 = tpu.concatenate %13, %14 in 0 : vector<16x32xf32>, vector<16x32xf32> -> vector<32x32xf32>
    %cst_16 = arith.constant dense<0.000000e+00> : vector<48x32xf32>
    %16 = tpu.matmul %1, %15, %cst_16 {dimension_numbers = #tpu.dot_dimension_numbers<[1], [0], [0], [1], [0, 0, 1, 1], [], []>} : vector<48x32xf32>, vector<32x32xf32>, vector<48x32xf32> -> vector<48x32xf32>
    %17 = vector.broadcast %10 : vector<1x32xf32> to vector<48x32xf32>
    %18 = arith.addf %16, %17 : vector<48x32xf32>
    %19 = arith.negf %18 : vector<48x32xf32>
    %20 = math.exp %19 : vector<48x32xf32>
    %cst_17 = arith.constant 1.000000e+00 : f32
    %21 = vector.broadcast %cst_17 : f32 to vector<48x32xf32>
    %22 = arith.addf %21, %20 : vector<48x32xf32>
    %23 = arith.divf %21, %22 : vector<48x32xf32>
    %cst_18 = arith.constant dense<0.000000e+00> : vector<48x32xf32>
    %24 = tpu.matmul %2, %12, %cst_18 {dimension_numbers = #tpu.dot_dimension_numbers<[1], [0], [0], [1], [0, 0, 1, 1], [], []>} : vector<48x16xf32>, vector<16x32xf32>, vector<48x32xf32> -> vector<48x32xf32>
    %25 = arith.mulf %23, %24 : vector<48x32xf32>
    %cst_19 = arith.constant dense<0.000000e+00> : vector<16x32xf32>
    %26 = tpu.matmul %3, %25, %cst_19 {dimension_numbers = #tpu.dot_dimension_numbers<[1], [0], [0], [1], [0, 0, 1, 1], [], []>} : vector<16x48xf32>, vector<48x32xf32>, vector<16x32xf32> -> vector<16x32xf32>
    %27 = vector.broadcast %4 : vector<16x1xf32> to vector<16x32xf32>
    %28 = arith.mulf %26, %27 : vector<16x32xf32>
    %29 = arith.addf %11, %28 : vector<16x32xf32>
    %30 = vector.broadcast %9 : vector<1x32xf32> to vector<16x32xf32>
    %31 = arith.addf %29, %30 : vector<16x32xf32>
    %c0_20 = arith.constant 0 : index
    %c0_21 = arith.constant 0 : index
    %32 = vector.load %arg11[%c0_20, %c0_21] : memref<1x32xf32, #tpu.memory_space<vmem>>, vector<1x32xf32>
    %c0_22 = arith.constant 0 : index
    %c0_23 = arith.constant 0 : index
    %33 = vector.load %arg12[%c0_22, %c0_23] : memref<1x32xf32, #tpu.memory_space<vmem>>, vector<1x32xf32>
    %34 = arith.mulf %31, %31 : vector<16x32xf32>
    %35 = tpu.concatenate %31, %34 in 1 : vector<16x32xf32>, vector<16x32xf32> -> vector<16x64xf32>
    %cst_24 = arith.constant dense<0.000000e+00> : vector<1x64xf32>
    %36 = tpu.matmul %5, %35, %cst_24 {dimension_numbers = #tpu.dot_dimension_numbers<[1], [0], [0], [1], [0, 0, 1, 1], [], []>} : vector<1x16xf32>, vector<16x64xf32>, vector<1x64xf32> -> vector<1x64xf32>
    %cst_25 = arith.constant 6.250000e-02 : f32
    %37 = vector.broadcast %cst_25 : f32 to vector<1x64xf32>
    %38 = arith.mulf %36, %37 : vector<1x64xf32>
    %39 = vector.extract_strided_slice %38 {offsets = [0, 0], sizes = [1, 32], strides = [1, 1]} : vector<1x64xf32> to vector<1x32xf32>
    %40 = vector.extract_strided_slice %38 {offsets = [0, 32], sizes = [1, 32], strides = [1, 1]} : vector<1x64xf32> to vector<1x32xf32>
    %41 = arith.mulf %39, %39 : vector<1x32xf32>
    %42 = arith.subf %40, %41 : vector<1x32xf32>
    %cst_26 = arith.constant 0.000000e+00 : f32
    %43 = vector.broadcast %cst_26 : f32 to vector<1x32xf32>
    %44 = arith.maximumf %42, %43 : vector<1x32xf32>
    %45 = vector.broadcast %39 : vector<1x32xf32> to vector<16x32xf32>
    %46 = arith.subf %31, %45 : vector<16x32xf32>
    %cst_27 = arith.constant 9.99999974E-6 : f32
    %47 = vector.broadcast %cst_27 : f32 to vector<1x32xf32>
    %48 = arith.addf %44, %47 : vector<1x32xf32>
    %49 = math.rsqrt %48 : vector<1x32xf32>
    %50 = vector.broadcast %49 : vector<1x32xf32> to vector<16x32xf32>
    %51 = arith.mulf %46, %50 : vector<16x32xf32>
    %52 = vector.broadcast %32 : vector<1x32xf32> to vector<16x32xf32>
    %53 = arith.mulf %51, %52 : vector<16x32xf32>
    %54 = vector.broadcast %33 : vector<1x32xf32> to vector<16x32xf32>
    %55 = arith.addf %53, %54 : vector<16x32xf32>
    %cst_28 = arith.constant 0.000000e+00 : f32
    %56 = vector.broadcast %cst_28 : f32 to vector<16x32xf32>
    %57 = arith.maximumf %55, %56 : vector<16x32xf32>
    %c0_29 = arith.constant 0 : index
    %c0_30 = arith.constant 0 : index
    %58 = vector.load %arg8[%c0_29, %c0_30] : memref<32x128xf32, #tpu.memory_space<vmem>>, vector<32x128xf32>
    %cst_31 = arith.constant dense<0.000000e+00> : vector<16x128xf32>
    %59 = tpu.matmul %57, %58, %cst_31 {dimension_numbers = #tpu.dot_dimension_numbers<[1], [0], [0], [1], [0, 0, 1, 1], [], []>} : vector<16x32xf32>, vector<32x128xf32>, vector<16x128xf32> -> vector<16x128xf32>
    %c0_32 = arith.constant 0 : index
    %c0_33 = arith.constant 0 : index
    %60 = vector.load %arg9[%c0_32, %c0_33] : memref<1x32xf32, #tpu.memory_space<vmem>>, vector<1x32xf32>
    %c0_34 = arith.constant 0 : index
    %c0_35 = arith.constant 0 : index
    %61 = vector.load %arg10[%c0_34, %c0_35] : memref<1x32xf32, #tpu.memory_space<vmem>>, vector<1x32xf32>
    %62 = vector.extract_strided_slice %59 {offsets = [0, 0], sizes = [16, 32], strides = [1, 1]} : vector<16x128xf32> to vector<16x32xf32>
    %63 = vector.extract_strided_slice %59 {offsets = [0, 32], sizes = [16, 32], strides = [1, 1]} : vector<16x128xf32> to vector<16x32xf32>
    %64 = vector.extract_strided_slice %59 {offsets = [0, 64], sizes = [16, 32], strides = [1, 1]} : vector<16x128xf32> to vector<16x32xf32>
    %65 = vector.extract_strided_slice %59 {offsets = [0, 96], sizes = [16, 32], strides = [1, 1]} : vector<16x128xf32> to vector<16x32xf32>
    %66 = tpu.concatenate %64, %65 in 0 : vector<16x32xf32>, vector<16x32xf32> -> vector<32x32xf32>
    %cst_36 = arith.constant dense<0.000000e+00> : vector<48x32xf32>
    %67 = tpu.matmul %1, %66, %cst_36 {dimension_numbers = #tpu.dot_dimension_numbers<[1], [0], [0], [1], [0, 0, 1, 1], [], []>} : vector<48x32xf32>, vector<32x32xf32>, vector<48x32xf32> -> vector<48x32xf32>
    %68 = vector.broadcast %61 : vector<1x32xf32> to vector<48x32xf32>
    %69 = arith.addf %67, %68 : vector<48x32xf32>
    %70 = arith.negf %69 : vector<48x32xf32>
    %71 = math.exp %70 : vector<48x32xf32>
    %cst_37 = arith.constant 1.000000e+00 : f32
    %72 = vector.broadcast %cst_37 : f32 to vector<48x32xf32>
    %73 = arith.addf %72, %71 : vector<48x32xf32>
    %74 = arith.divf %72, %73 : vector<48x32xf32>
    %cst_38 = arith.constant dense<0.000000e+00> : vector<48x32xf32>
    %75 = tpu.matmul %2, %63, %cst_38 {dimension_numbers = #tpu.dot_dimension_numbers<[1], [0], [0], [1], [0, 0, 1, 1], [], []>} : vector<48x16xf32>, vector<16x32xf32>, vector<48x32xf32> -> vector<48x32xf32>
    %76 = arith.mulf %74, %75 : vector<48x32xf32>
    %cst_39 = arith.constant dense<0.000000e+00> : vector<16x32xf32>
    %77 = tpu.matmul %3, %76, %cst_39 {dimension_numbers = #tpu.dot_dimension_numbers<[1], [0], [0], [1], [0, 0, 1, 1], [], []>} : vector<16x48xf32>, vector<48x32xf32>, vector<16x32xf32> -> vector<16x32xf32>
    %78 = vector.broadcast %4 : vector<16x1xf32> to vector<16x32xf32>
    %79 = arith.mulf %77, %78 : vector<16x32xf32>
    %80 = arith.addf %62, %79 : vector<16x32xf32>
    %81 = vector.broadcast %60 : vector<1x32xf32> to vector<16x32xf32>
    %82 = arith.addf %80, %81 : vector<16x32xf32>
    %c0_40 = arith.constant 0 : index
    %c0_41 = arith.constant 0 : index
    %83 = vector.load %arg13[%c0_40, %c0_41] : memref<1x32xf32, #tpu.memory_space<vmem>>, vector<1x32xf32>
    %c0_42 = arith.constant 0 : index
    %c0_43 = arith.constant 0 : index
    %84 = vector.load %arg14[%c0_42, %c0_43] : memref<1x32xf32, #tpu.memory_space<vmem>>, vector<1x32xf32>
    %85 = arith.mulf %82, %82 : vector<16x32xf32>
    %86 = tpu.concatenate %82, %85 in 1 : vector<16x32xf32>, vector<16x32xf32> -> vector<16x64xf32>
    %cst_44 = arith.constant dense<0.000000e+00> : vector<1x64xf32>
    %87 = tpu.matmul %5, %86, %cst_44 {dimension_numbers = #tpu.dot_dimension_numbers<[1], [0], [0], [1], [0, 0, 1, 1], [], []>} : vector<1x16xf32>, vector<16x64xf32>, vector<1x64xf32> -> vector<1x64xf32>
    %cst_45 = arith.constant 6.250000e-02 : f32
    %88 = vector.broadcast %cst_45 : f32 to vector<1x64xf32>
    %89 = arith.mulf %87, %88 : vector<1x64xf32>
    %90 = vector.extract_strided_slice %89 {offsets = [0, 0], sizes = [1, 32], strides = [1, 1]} : vector<1x64xf32> to vector<1x32xf32>
    %91 = vector.extract_strided_slice %89 {offsets = [0, 32], sizes = [1, 32], strides = [1, 1]} : vector<1x64xf32> to vector<1x32xf32>
    %92 = arith.mulf %90, %90 : vector<1x32xf32>
    %93 = arith.subf %91, %92 : vector<1x32xf32>
    %cst_46 = arith.constant 0.000000e+00 : f32
    %94 = vector.broadcast %cst_46 : f32 to vector<1x32xf32>
    %95 = arith.maximumf %93, %94 : vector<1x32xf32>
    %96 = vector.broadcast %90 : vector<1x32xf32> to vector<16x32xf32>
    %97 = arith.subf %82, %96 : vector<16x32xf32>
    %cst_47 = arith.constant 9.99999974E-6 : f32
    %98 = vector.broadcast %cst_47 : f32 to vector<1x32xf32>
    %99 = arith.addf %95, %98 : vector<1x32xf32>
    %100 = math.rsqrt %99 : vector<1x32xf32>
    %101 = vector.broadcast %100 : vector<1x32xf32> to vector<16x32xf32>
    %102 = arith.mulf %97, %101 : vector<16x32xf32>
    %103 = vector.broadcast %83 : vector<1x32xf32> to vector<16x32xf32>
    %104 = arith.mulf %102, %103 : vector<16x32xf32>
    %105 = vector.broadcast %84 : vector<1x32xf32> to vector<16x32xf32>
    %106 = arith.addf %104, %105 : vector<16x32xf32>
    %107 = arith.addf %106, %8 : vector<16x32xf32>
    %cst_48 = arith.constant 0.000000e+00 : f32
    %108 = vector.broadcast %cst_48 : f32 to vector<16x32xf32>
    %109 = arith.maximumf %107, %108 : vector<16x32xf32>
    %c0_49 = arith.constant 0 : index
    %c0_50 = arith.constant 0 : index
    %110 = vector.load %arg15[%c0_49, %c0_50] : memref<16x32xf32, #tpu.memory_space<vmem>>, vector<16x32xf32>
    tpu.vector_store %arg15[%c0_49, %c0_50], %109 {strides = array<i32>} : memref<16x32xf32, #tpu.memory_space<vmem>>, vector<16x32xf32>,
    return
  }
}

</mosaic_0001>

<bundles_post_ra>
// kernel: tpu_custom_call.1
= control target key start
LH: loop header
LB: loop body
LE: loop exit
PB: predicated region body
PF: predicated region fallthrough
CT: control target
= control target key end

     0   :  { %vm71_vm0 = vcmask 64512   ;;  %v1692_v3 = vmov 0.0   ;;  %s2055_s0 = inlined_call_operand.vmem [shape: f32[16,8], index: 0, kind: input, shape index: {}]   ;;  %s2056_s1 = inlined_call_operand.vmem [shape: f32[48,32], index: 1, kind: input, shape index: {}]   ;;  %s2057_s2 = inlined_call_operand.vmem [shape: f32[48,16], index: 2, kind: input, shape index: {}]   ;;  %s2058_s3 = inlined_call_operand.vmem [shape: f32[16,48], index: 3, kind: input, shape index: {}]   ;;  %s2059_s4 = inlined_call_operand.vmem [shape: f32[16,1], index: 4, kind: input, shape index: {}]   ;;  %s2060_s5 = inlined_call_operand.vmem [shape: f32[8,160], index: 5, kind: input, shape index: {}]   ;;  %s2061_s6 = inlined_call_operand.vmem [shape: f32[1,32], index: 6, kind: input, shape index: {}]   ;;  %s2062_s7 = inlined_call_operand.vmem [shape: f32[1,32], index: 7, kind: input, shape index: {}]   ;;  %s2063_s8 = inlined_call_operand.vmem [shape: f32[32,128], index: 8, kind: input, shape index: {}]   ;;  %s2064_s9 = inlined_call_operand.vmem [shape: f32[1,32], index: 9, kind: input, shape index: {}]   ;;  %s2065_s10 = inlined_call_operand.vmem [shape: f32[1,32], index: 10, kind: input, shape index: {}]   ;;  %s2066_s11 = inlined_call_operand.vmem [shape: f32[1,32], index: 11, kind: input, shape index: {}]   ;;  %s2067_s12 = inlined_call_operand.vmem [shape: f32[1,32], index: 12, kind: input, shape index: {}]   ;;  %s2068_s13 = inlined_call_operand.vmem [shape: f32[1,32], index: 13, kind: input, shape index: {}]   ;;  %s2069_s14 = inlined_call_operand.vmem [shape: f32[1,32], index: 14, kind: input, shape index: {}]   ;;  %s2070_s15 = inlined_call_operand.hbm [shape: f32[16,32], index: 15, kind: output, shape index: {}]  }
   0x1   :  { %v70_v0 = vld [vmem:[%s2060_s5 + $0x8] sm:$0xff]  ;;  %v69_v1 = vld [vmem:[%s2060_s5] sm:$0xff]  ;;  %142 = vmatprep.mubr.f32.mxu0 %v1692_v3 }
   0x2   :  { %v51_v2 = vld [vmem:[%s2055_s0] sm:$0xff]  ;;  %78 = vmatprep.subr.mxu0 %v70_v0 }
   0x3   :  { %20 = vsyncpa [#allocation3], 0  ;;  %79 = vmatpush1.msra.mxu0 %v69_v1  ;;  %v52_v4 = vld [vmem:[%s2055_s0 + $0x8] sm:$0xff]  ;;  %s1693_s5 = smov 96   ;;  %s1694_s26 = smov 64   ;;  %v1812_v10 = vld [vmem:[%s2056_s1] sm:$0xff] }
   0x4   :  { %1268 = vmatmul.mubr.msk.f32.vlgmr.msra.gmra.mrb[0].mxu0 %vm71_vm0, %v51_v2  ;;  %vm181_vm1 = vcmask 261120   ;;  %v1820_v19 = vld [vmem:[%s2057_s2] sm:$0xff]  ;;  %vm333_vm2 = vcmask 130048   ;;  %v1825_v20 = vld [vmem:[%s2057_s2 + $0x8] sm:$0xff]  ;;  %v1830_v21 = vld [vmem:[%s2057_s2 + $0x10] sm:$0xff]  ;;  %vm453_vm3 = vcmask 392192  }
   0x5   :  { %148 = vmatprep.mubr.f32.mxu0 %v1692_v3  ;;  %1394 = vmatprep.mubr.msk.f32.mxu1 %vm181_vm1, %v1812_v10  ;;  %v1841_v22 = vld [vmem:[%s2057_s2 + $0x18] sm:$0xff]  ;;  %v1846_v23 = vld [vmem:[%s2057_s2 + $0x20] sm:$0xff]  ;;  %v1855_v24 = vld [vmem:[%s2057_s2 + $0x28] sm:$0xff]  ;;  %v1695_v43 = vmov 0   ;;  %vm1697_vm4 = vmmov 0  }
   0x6   :  { %v1862_v29 = vld [vmem:[%s2056_s1 + $0x8] sm:$0xff]  ;;  %v1867_v30 = vld [vmem:[%s2056_s1 + $0x10] sm:$0xff]  ;;  %v1876_v31 = vld [vmem:[%s2056_s1 + $0x18] sm:$0xff]  ;;  %1590 = vset.pattern.permute.xlu0 %v1695_v43  ;;  %1589 = vset.pattern.permute.xlu1 %v1695_v43 }
   0x7   :  { %v1881_v32 = vld [vmem:[%s2056_s1 + $0x20] sm:$0xff]  ;;  %v1890_v33 = vld [vmem:[%s2056_s1 + $0x28] sm:$0xff] }
   0x8   :  { %1269 = vmatmul.mubr.msk.f32.gmra.mrb[2].mxu0 %vm71_vm0, %v52_v4  ;;  %v1905_v40 = vld [vmem:[%s2058_s3] sm:$0xff]  ;;  %v68_v41 = vld [vmem:[%s2059_s4 + $0x8] sm:$0xff] }
   0x9   :  { %1407 = vmatprep.mubr.msk.f32.mxu0 %vm333_vm2, %v1820_v19  ;;  %v67_v42 = vld [vmem:[%s2059_s4] sm:$0xff] }
   0xa   :  { %v1270_v44 = vld [vmem:[%s2062_s7] ss:$0 sm:$0xff] }
  0xd7   :  { %v1797_v5 = vpop.f32.mrb[0].mxu0 }
  0xd8   :  { %v1799_v6 = vpop.f32.mrb[1].mxu0 }
  0xdb   :  { %v1801_v7 = vpop.f32.mrb[2].mxu0 }
  0xdc   :  { %v1579_v8 = vpack.i.bf16 %v1801_v7, %v1797_v5  ;;  %v1805_v9 = vpop.f32.mrb[3].mxu0 }
  0xde   :  { %1575 = vrot.lane.b32.xlu0 %v1579_v8, %s1693_s5 }
  0xe2   :  { %1580 = vrot.lane.b32.xlu0 %v1579_v8, %s1694_s26 }
  0xe6   :  { %542 = vperm.xlu0 %1590, %v68_v41  }
 0x150   :  { %v1576_v11 = vpop.permute.xlu0 %1575 }
 0x151   :  { %v1578_v12 = vunpack.i.h.bf16 %v1576_v11  ;;  %v1577_v13 = vunpack.i.l.bf16 %v1576_v11  ;;  %1585 = vrot.lane.b32.xlu1 %v1576_v11, %s1694_s26 }
 0x153   :  { %v1509_v14 = vpack.c.bf16 %v1578_v12, %v1577_v13 }
 0x154   :  { %v1581_v15 = vpop.permute.xlu0 %1580 }
 0x155   :  { %v1583_v16 = vunpack.i.h.bf16 %v1581_v15  ;;  %v1582_v17 = vunpack.i.l.bf16 %v1581_v15  ;;  %1510 = vmatprep.subr.bf16.mxu0 %v1509_v14  ;;  %537 = vperm.xlu1 %1589, %v67_v42  }
 0x156   :  { %1512 = vmatpush3.bf16.msra.mxu0 %v1509_v14 }
 0x157   :  { %v1501_v18 = vpack.c.bf16 %v1583_v16, %v1582_v17 }
 0x159   :  { %1502 = vmatprep.subr.bf16.mxu1 %v1501_v18  ;;  %1408 = vmatmul.mubr.msk.f32.vlgmr.msra.gmra.mrb[4].mxu0 %vm333_vm2, %v1825_v20 }
 0x15a   :  { %1504 = vmatpush3.bf16.msra.mxu1 %v1501_v18  ;;  %1410 = vmatprep.mubr.msk.f32.mxu0 %vm333_vm2, %v1830_v21 }
 0x15d   :  { %1411 = vmatmul.mubr.msk.f32.gmra.mrb[6].mxu0 %vm333_vm2, %v1841_v22 }
 0x15e   :  { %1413 = vmatprep.mubr.msk.f32.mxu0 %vm333_vm2, %v1846_v23 }
 0x161   :  { %1414 = vmatmul.mubr.msk.f32.gmra.mrb[8].mxu0 %vm333_vm2, %v1855_v24 }
 0x162   :  { %1435 = vmatprep.mubr.msk.f32.mxu0 %vm1697_vm4, %v1692_v3 }
 0x1c3   :  { %v1586_v25 = vpop.permute.xlu1 %1585 }
 0x1c4   :  { %v1588_v26 = vunpack.i.h.bf16 %v1586_v25  ;;  %v1587_v27 = vunpack.i.l.bf16 %v1586_v25 }
 0x1c6   :  { %v1505_v28 = vpack.c.bf16 %v1588_v26, %v1587_v27 }
 0x1c8   :  { %1506 = vmatprep.subr.bf16.mxu1 %v1505_v28 }
 0x1c9   :  { %1508 = vmatpush3.bf16.msra.mxu1 %v1505_v28 }
 0x1cc   :  { %1395 = vmatmul.mubr.msk.f32.vlgmr.msra.gmra.mrb[0].mxu1 %vm181_vm1, %v1862_v29 }
 0x1cd   :  { %1397 = vmatprep.mubr.msk.f32.mxu1 %vm181_vm1, %v1867_v30 }
 0x1d0   :  { %1398 = vmatmul.mubr.msk.f32.gmra.mrb[2].mxu1 %vm181_vm1, %v1876_v31 }
 0x1d1   :  { %1400 = vmatprep.mubr.msk.f32.mxu1 %vm181_vm1, %v1881_v32 }
 0x1d4   :  { %1401 = vmatmul.mubr.msk.f32.gmra.mrb[4].mxu1 %vm181_vm1, %v1890_v33 }
 0x1d5   :  { %1428 = vmatprep.mubr.msk.f32.mxu1 %vm453_vm3, %v1905_v40 }
 0x22c   :  { %v1409_v34 = vpop.f32.mrb[4].mxu0 }
 0x22d   :  { %v418_v35 = vpop.f32.mrb[5].mxu0 }
 0x230   :  { %v1894_v36 = vpop.f32.mrb[6].mxu0 }
 0x231   :  { %v1896_v37 = vpop.f32.mrb[7].mxu0 }
 0x234   :  { %v1898_v38 = vpop.f32.mrb[8].mxu0 }
 0x235   :  { %v1900_v39 = vpop.f32.mrb[9].mxu0 }
 0x29f   :  { %v1396_v45 = vpop.f32.mrb[0].mxu1 }
 0x2a0   :  { %v272_v46 = vadd.f32 %v1396_v45, %v1270_v44  ;;  %v266_v47 = vpop.f32.mrb[1].mxu1 }
 0x2a1   :  { %v267_v48 = vadd.f32 %v1270_v44, %v266_v47 }
 0x2a2   :  { %v1278_v49 = vmul.f32 -1.442695, %v272_v46 }
 0x2a3   :  { %v1277_v50 = vmul.f32 -1.442695, %v267_v48  ;;  %v1399_v51 = vpop.f32.mrb[2].mxu1 }
 0x2a4   :  { %1616 = vpow2.f32 %v1278_v49  ;;  %v282_v52 = vadd.f32 %v1399_v51, %v1270_v44  ;;  %v276_v53 = vpop.f32.mrb[3].mxu1 }
 0x2a5   :  { %1618 = vpow2.f32 %v1277_v50  ;;  %v277_v54 = vadd.f32 %v1270_v44, %v276_v53  ;;  %v1291_v50 = vld [vmem:[%s2061_s6] ss:$0 sm:$0xff]  ;;  %v1696_v53 = vmov 0.0|0.0  }
 0x2a6   :  { %v1280_v55 = vmul.f32 -1.442695, %v282_v52  ;;  %1525 = vmatprep.subr.bf16.mxu0 %v1696_v53 }
 0x2a7   :  { %v1279_v56 = vmul.f32 -1.442695, %v277_v54  ;;  %v1402_v57 = vpop.f32.mrb[4].mxu1 }
 0x2a8   :  { %1620 = vpow2.f32 %v1280_v55  ;;  %v292_v58 = vadd.f32 %v1402_v57, %v1270_v44  ;;  %v286_v59 = vpop.f32.mrb[5].mxu1 }
 0x2a9   :  { %1622 = vpow2.f32 %v1279_v56  ;;  %v287_v60 = vadd.f32 %v1270_v44, %v286_v59 }
 0x2aa   :  { %v1282_v61 = vmul.f32 -1.442695, %v292_v58 }
 0x2ab   :  { %v1281_v62 = vmul.f32 -1.442695, %v287_v60 }
 0x2ac   :  { %1624 = vpow2.f32 %v1282_v61 }
 0x2ad   :  { %1626 = vpow2.f32 %v1281_v62 }
 0x2ae   :  { %v1617_v63 = vpop.eup %1616 }
 0x2af   :  { %v1619_v0 = vpop.eup %1618  ;;  %v314_v1 = vadd.f32 1.0, %v1617_v63 }
 0x2b0   :  { %v313_v2 = vadd.f32 1.0, %v1619_v0  ;;  %v1699_v0 = vmov 1.0  }
 0x2b1   :  { %1628 = vrcp.f32 %v314_v1 }
 0x2b2   :  { %v1621_v4 = vpop.eup %1620  ;;  %1630 = vrcp.f32 %v313_v2 }
 0x2b3   :  { %v1623_v8 = vpop.eup %1622  ;;  %v316_v11 = vadd.f32 1.0, %v1621_v4 }
 0x2b4   :  { %v315_v12 = vadd.f32 1.0, %v1623_v8 }
 0x2b5   :  { %1632 = vrcp.f32 %v316_v11 }
 0x2b6   :  { %v1625_v13 = vpop.eup %1624  ;;  %1634 = vrcp.f32 %v315_v12 }
 0x2b7   :  { %v1627_v14 = vpop.eup %1626  ;;  %v318_v15 = vadd.f32 1.0, %v1625_v13 }
 0x2b8   :  { %v317_v16 = vadd.f32 1.0, %v1627_v14 }
 0x2b9   :  { %1636 = vrcp.f32 %v318_v15  ;;  %v688_v15 = vld [vmem:[%s2063_s8] sm:$0xff] }
 0x2ba   :  { %1638 = vrcp.f32 %v317_v16  ;;  %v689_v16 = vld [vmem:[%s2063_s8 + $0x8] sm:$0xff] }
 0x2bb   :  { %v1629_v17 = vpop.eup %1628 }
 0x2bc   :  { %v1631_v18 = vpop.eup %1630  ;;  %v448_v25 = vmul.f32 %v1629_v17, %v1409_v34  ;;  %v1528_v17 = vpack.c.bf16 %v689_v16, %v688_v15 }
 0x2bd   :  { %v447_v26 = vmul.f32 %v1631_v18, %v418_v35  ;;  %v1925_v35 = vld [vmem:[%s2058_s3 + $0x8] sm:$0xff]  ;;  %s1698_s3 = smov 32   ;;  %v690_v18 = vld [vmem:[%s2063_s8 + $0x10] sm:$0xff] }
 0x2bf   :  { %v1633_v27 = vpop.eup %1632  ;;  %v1513_v28 = vpack.c.bf16 %v448_v25, %v447_v26  ;;  %v691_v25 = vld [vmem:[%s2063_s8 + $0x18] sm:$0xff] }
 0x2c0   :  { %v1635_v41 = vpop.eup %1634  ;;  %v450_v42 = vmul.f32 %v1633_v27, %v1894_v36  ;;  %v1929_v36 = vpop.permute.xlu0 %542  ;;  %v1532_v26 = vpack.c.bf16 %v691_v25, %v690_v18 }
 0x2c1   :  { %v449_v43 = vmul.f32 %v1635_v41, %v1896_v37  ;;  %1514 = vmatprep.subr.bf16.mxu1 %v1513_v28  ;;  %v1931_v37 = vpop.permute.xlu1 %537 }
 0x2c2   :  { %1516 = vmatpush3.bf16.msra.mxu1 %v1513_v28 }
 0x2c3   :  { %v1637_v44 = vpop.eup %1636  ;;  %v1517_v45 = vpack.c.bf16 %v450_v42, %v449_v43 }
 0x2c4   :  { %v1639_v46 = vpop.eup %1638  ;;  %v452_v47 = vmul.f32 %v1637_v44, %v1898_v38 }
 0x2c5   :  { %v451_v48 = vmul.f32 %v1639_v46, %v1900_v39  ;;  %1518 = vmatprep.subr.bf16.mxu1 %v1517_v45  ;;  %v1293_v46 = vld [vmem:[%s2066_s11] ss:$0 sm:$0xff] }
 0x2c6   :  { %1520 = vmatpush3.bf16.msra.mxu1 %v1517_v45 }
 0x2c7   :  { %v1521_v34 = vpack.c.bf16 %v452_v47, %v451_v48 }
 0x2c9   :  { %1522 = vmatprep.subr.bf16.mxu1 %v1521_v34 }
 0x2ca   :  { %1524 = vmatpush3.bf16.msra.mxu1 %v1521_v34 }
 0x2cb   :  { %1529 = vmatprep.subr.bf16.mxu1 %v1528_v17 }
 0x2cd   :  { %1429 = vmatmul.mubr.msk.f32.vlgmr.msra.gmra.mrb[6].mxu1 %vm453_vm3, %v1925_v35 }
 0x2ce   :  { %1531 = vmatpush3.bf16.msra.mxu1 %v1528_v17 }
 0x2cf   :  { %1533 = vmatprep.subr.bf16.mxu1 %v1532_v26 }
 0x2d2   :  { %1535 = vmatpush3.bf16.msra.mxu1 %v1532_v26 }
 0x3a0   :  { %v1430_v38 = vpop.f32.mrb[6].mxu1 }
 0x3a1   :  { %v546_v39 = vmul.f32 %v1430_v38, %v1929_v36  ;;  %v526_v49 = vpop.f32.mrb[7].mxu1  ;;  %v1294_v38 = vld [vmem:[%s2067_s12] ss:$0 sm:$0xff] }
 0x3a2   :  { %v545_v51 = vmul.f32 %v1931_v37, %v526_v49 }
 0x3a3   :  { %v548_v52 = vadd.f32 %v546_v39, %v1801_v7 }
 0x3a4   :  { %v547_v54 = vadd.f32 %v545_v51, %v1797_v5 }
 0x3a5   :  { %v556_v55 = vadd.f32 %v1291_v50, %v548_v52 }
 0x3a6   :  { %v555_v56 = vadd.f32 %v1291_v50, %v547_v54 }
 0x3a7   :  { %v560_v57 = vmul.f32 %v556_v55, %v556_v55 }
 0x3a8   :  { %v559_v58 = vmul.f32 %v555_v56, %v555_v56 }
 0x3aa   :  { %v1591_v59 = vpack.i.bf16 %v560_v57, %v559_v58 }
 0x3ac   :  { %1592 = vrot.lane.b32.xlu1 %v1591_v59, %s1698_s3 }
 0x41e   :  { %v1593_v60 = vpop.permute.xlu1 %1592 }
 0x41f   :  { %v1595_v61 = vunpack.i.h.bf16 %v1593_v60  ;;  %v1594_v7 = vunpack.i.l.bf16 %v1593_v60 }
 0x421   :  { %v570_v62 = vsel %vm181_vm1, %v556_v55, %v1595_v61  ;;  %v569_v63 = vsel %vm181_vm1, %v555_v56, %v1594_v7 }
 0x422   :  { %v1526_v5 = vpack.c.bf16 %v570_v62, %v569_v63 }
 0x424   :  { %1527 = vmatpush3.bf16.msra.mxu0 %v1526_v5 }
 0x427   :  { %1436 = vmatmul.mubr.msk.f32.vlgmr.msra.gmra.mrb[10].mxu0 %vm333_vm2, %v1699_v0 }
 0x428   :  { %1457 = vmatprep.mubr.msk.f32.mxu0 %vm181_vm1, %v1812_v10  ;;  %v652_v10 = vlaneseq }
 0x42a   :  { %v653_v27 = vshrl.u32 %v652_v10, 7 }
 0x42c   :  { %v1963_v28 = vsub.s32 0, %v653_v27 }
 0x4fa   :  { %v640_v1 = vpop.f32.mrb[10].mxu0 }
 0x4fb   :  { %v644_v2 = vmul.f32 0.0625, %v640_v1  ;;  %v1437_v4 = vpop.f32.mrb[11].mxu0 }
 0x4fd   :  { %v645_v8 = vmul.f32 %v644_v2, %v644_v2  ;;  %v655_v43 = vrot.slane %v644_v2, %v1963_v28 }
 0x4ff   :  { %647 = vrot.lane.b32.xlu1 %v645_v8, %s1698_s3  ;;  %v656_v44 = vsub.f32 %v555_v56, %v655_v43  ;;  %v657_v45 = vsub.f32 %v556_v55, %v655_v43 }
 0x571   :  { %v648_v11 = vpop.permute.xlu1 %647 }
 0x572   :  { %v650_v12 = vsub.f32 %v644_v2, %v648_v11 }
 0x574   :  { %v651_v13 = vmax.f32 %v650_v12, 0.0 }
 0x576   :  { %v658_v14 = vadd.f32 1e-05, %v651_v13 }
 0x578   :  { %1640 = vrsqrt.f32 %v658_v14 }
 0x582   :  { %v1641_v41 = vpop.eup %1640 }
 0x583   :  { %v663_v42 = vrot.slane %v1641_v41, %v1963_v28 }
 0x585   :  { %665 = vrot.lane.b32.xlu0 %v663_v42, %s1693_s5 }
 0x5f7   :  { %v666_v47 = vpop.permute.xlu0 %665 }
 0x5f8   :  { %v668_v48 = vmul.f32 %v666_v47, %v656_v44  ;;  %v669_v34 = vmul.f32 %v666_v47, %v657_v45 }
 0x5fa   :  { %v676_v39 = vmul.f32 %v1293_v46, %v668_v48  ;;  %v677_v49 = vmul.f32 %v1293_v46, %v669_v34 }
 0x5fc   :  { %v684_v50 = vadd.f32 %v1294_v38, %v676_v39  ;;  %v685_v51 = vadd.f32 %v1294_v38, %v677_v49 }
 0x5fe   :  { %v686_v52 = vmax.f32 %v684_v50, 0.0  ;;  %v687_v54 = vmax.f32 %v685_v51, 0.0 }
 0x600   :  { %1446 = vmatprep.mubr.msk.f32.mxu1 %vm181_vm1, %v686_v52 }
 0x601   :  { %1447 = vmatmul.mubr.msk.f32.vlgmr.msra.gmra.mrb[8].mxu1 %vm181_vm1, %v687_v54 }
 0x602   :  { %1470 = vmatprep.mubr.msk.f32.mxu1 %vm333_vm2, %v1820_v19 }
 0x6d4   :  { %v1978_v55 = vpop.f32.mrb[8].mxu1 }
 0x6d5   :  { %v1980_v56 = vpop.f32.mrb[9].mxu1 }
 0x6d6   :  { %v1601_v57 = vpack.i.bf16 %v1978_v55, %v1980_v56 }
 0x6d8   :  { %1602 = vrot.lane.b32.xlu0 %v1601_v57, %s1694_s26  ;;  %1597 = vrot.lane.b32.xlu1 %v1601_v57, %s1693_s5 }
 0x74a   :  { %v1603_v58 = vpop.permute.xlu0 %1602  ;;  %v1598_v59 = vpop.permute.xlu1 %1597 }
 0x74b   :  { %v1605_v60 = vunpack.i.h.bf16 %v1603_v58  ;;  %v1604_v61 = vunpack.i.l.bf16 %v1603_v58  ;;  %v1600_v7 = vunpack.i.h.bf16 %v1598_v59  ;;  %v1599_v62 = vunpack.i.l.bf16 %v1598_v59  ;;  %1607 = vrot.lane.b32.xlu1 %v1598_v59, %s1694_s26 }
 0x74d   :  { %v1536_v63 = vpack.c.bf16 %v1605_v60, %v1604_v61  ;;  %v1544_v5 = vpack.c.bf16 %v1600_v7, %v1599_v62 }
 0x74f   :  { %1537 = vmatprep.subr.bf16.mxu0 %v1536_v63  ;;  %1545 = vmatprep.subr.bf16.mxu1 %v1544_v5 }
 0x750   :  { %1539 = vmatpush3.bf16.msra.mxu0 %v1536_v63  ;;  %1547 = vmatpush3.bf16.msra.mxu1 %v1544_v5 }
 0x751   :  { %1560 = vmatprep.subr.bf16.mxu1 %v1696_v53 }
 0x753   :  { %1471 = vmatmul.mubr.msk.f32.vlgmr.msra.gmra.mrb[10].mxu1 %vm333_vm2, %v1825_v20 }
 0x754   :  { %1473 = vmatprep.mubr.msk.f32.mxu1 %vm333_vm2, %v1830_v21 }
 0x757   :  { %1474 = vmatmul.mubr.msk.f32.gmra.mrb[12].mxu1 %vm333_vm2, %v1841_v22 }
 0x758   :  { %1476 = vmatprep.mubr.msk.f32.mxu1 %vm333_vm2, %v1846_v23 }
 0x75b   :  { %1477 = vmatmul.mubr.msk.f32.gmra.mrb[14].mxu1 %vm333_vm2, %v1855_v24 }
 0x75c   :  { %1498 = vmatprep.mubr.msk.f32.mxu1 %vm1697_vm4, %v1692_v3 }
 0x7bd   :  { %v1608_v19 = vpop.permute.xlu1 %1607 }
 0x7be   :  { %v1610_v53 = vunpack.i.h.bf16 %v1608_v19  ;;  %v1609_v1 = vunpack.i.l.bf16 %v1608_v19 }
 0x7c0   :  { %v1540_v2 = vpack.c.bf16 %v1610_v53, %v1609_v1 }
 0x7c2   :  { %1541 = vmatprep.subr.bf16.mxu0 %v1540_v2 }
 0x7c3   :  { %1543 = vmatpush3.bf16.msra.mxu0 %v1540_v2 }
 0x7c6   :  { %1458 = vmatmul.mubr.msk.f32.vlgmr.msra.gmra.mrb[12].mxu0 %vm181_vm1, %v1862_v29  ;;  %v1297_v29 = vld [vmem:[%s2065_s10] ss:$0 sm:$0xff] }
 0x7c7   :  { %1460 = vmatprep.mubr.msk.f32.mxu0 %vm181_vm1, %v1867_v30 }
 0x7ca   :  { %1461 = vmatmul.mubr.msk.f32.gmra.mrb[14].mxu0 %vm181_vm1, %v1876_v31 }
 0x7cb   :  { %1463 = vmatprep.mubr.msk.f32.mxu0 %vm181_vm1, %v1881_v32 }
 0x7ce   :  { %1464 = vmatmul.mubr.msk.f32.gmra.mrb[16].mxu0 %vm181_vm1, %v1890_v33 }
 0x7cf   :  { %1491 = vmatprep.mubr.msk.f32.mxu0 %vm453_vm3, %v1905_v40 }
 0x826   :  { %v1472_v3 = vpop.f32.mrb[10].mxu1 }
 0x827   :  { %v998_v20 = vpop.f32.mrb[11].mxu1 }
 0x82a   :  { %v1475_v21 = vpop.f32.mrb[12].mxu1 }
 0x82b   :  { %v1008_v22 = vpop.f32.mrb[13].mxu1 }
 0x82e   :  { %v1478_v23 = vpop.f32.mrb[14].mxu1 }
 0x82f   :  { %v1018_v24 = vpop.f32.mrb[15].mxu1 }
 0x899   :  { %v1459_v30 = vpop.f32.mrb[12].mxu0 }
 0x89a   :  { %v871_v31 = vadd.f32 %v1459_v30, %v1297_v29  ;;  %v865_v4 = vpop.f32.mrb[13].mxu0 }
 0x89b   :  { %v866_v32 = vadd.f32 %v1297_v29, %v865_v4 }
 0x89c   :  { %v1305_v8 = vmul.f32 -1.442695, %v871_v31 }
 0x89d   :  { %v1304_v11 = vmul.f32 -1.442695, %v866_v32  ;;  %v1462_v33 = vpop.f32.mrb[14].mxu0 }
 0x89e   :  { %1642 = vpow2.f32 %v1305_v8  ;;  %v881_v12 = vadd.f32 %v1462_v33, %v1297_v29  ;;  %v875_v40 = vpop.f32.mrb[15].mxu0 }
 0x89f   :  { %1644 = vpow2.f32 %v1304_v11  ;;  %v876_v13 = vadd.f32 %v1297_v29, %v875_v40 }
 0x8a0   :  { %v1307_v14 = vmul.f32 -1.442695, %v881_v12 }
 0x8a1   :  { %v1306_v15 = vmul.f32 -1.442695, %v876_v13  ;;  %v1465_v16 = vpop.f32.mrb[16].mxu0 }
 0x8a2   :  { %1646 = vpow2.f32 %v1307_v14  ;;  %v891_v17 = vadd.f32 %v1465_v16, %v1297_v29  ;;  %v885_v10 = vpop.f32.mrb[17].mxu0 }
 0x8a3   :  { %1648 = vpow2.f32 %v1306_v15  ;;  %v886_v18 = vadd.f32 %v1297_v29, %v885_v10 }
 0x8a4   :  { %v1309_v25 = vmul.f32 -1.442695, %v891_v17 }
 0x8a5   :  { %v1308_v26 = vmul.f32 -1.442695, %v886_v18  ;;  %v1320_v18 = vld [vmem:[%s2068_s13] ss:$0 sm:$0xff] }
 0x8a6   :  { %1650 = vpow2.f32 %v1309_v25 }
 0x8a7   :  { %1652 = vpow2.f32 %v1308_v26 }
 0x8a8   :  { %v1643_v27 = vpop.eup %1642 }
 0x8a9   :  { %v1645_v41 = vpop.eup %1644  ;;  %v913_v42 = vadd.f32 1.0, %v1643_v27 }
 0x8aa   :  { %v912_v43 = vadd.f32 1.0, %v1645_v41  ;;  %v1321_v41 = vld [vmem:[%s2069_s14] ss:$0 sm:$0xff] }
 0x8ab   :  { %1654 = vrcp.f32 %v913_v42 }
 0x8ac   :  { %v1647_v44 = vpop.eup %1646  ;;  %1656 = vrcp.f32 %v912_v43 }
 0x8ad   :  { %v1649_v45 = vpop.eup %1648  ;;  %v915_v46 = vadd.f32 1.0, %v1647_v44 }
 0x8ae   :  { %v914_v47 = vadd.f32 1.0, %v1649_v45 }
 0x8af   :  { %1658 = vrcp.f32 %v915_v46 }
 0x8b0   :  { %v1651_v48 = vpop.eup %1650  ;;  %1660 = vrcp.f32 %v914_v47 }
 0x8b1   :  { %v1653_v34 = vpop.eup %1652  ;;  %v917_v38 = vadd.f32 1.0, %v1651_v48 }
 0x8b2   :  { %v916_v39 = vadd.f32 1.0, %v1653_v34 }
 0x8b3   :  { %1662 = vrcp.f32 %v917_v38 }
 0x8b4   :  { %1664 = vrcp.f32 %v916_v39 }
 0x8b5   :  { %v1655_v49 = vpop.eup %1654 }
 0x8b6   :  { %v1657_v50 = vpop.eup %1656  ;;  %v1028_v51 = vmul.f32 %v1655_v49, %v1472_v3  ;;  %v1318_v3 = vld [vmem:[%s2064_s9] ss:$0 sm:$0xff] }
 0x8b7   :  { %v1027_v52 = vmul.f32 %v1657_v50, %v998_v20 }
 0x8b9   :  { %v1659_v54 = vpop.eup %1658  ;;  %v1548_v57 = vpack.c.bf16 %v1028_v51, %v1027_v52 }
 0x8ba   :  { %v1661_v58 = vpop.eup %1660  ;;  %v1030_v59 = vmul.f32 %v1659_v54, %v1475_v21 }
 0x8bb   :  { %v1029_v60 = vmul.f32 %v1661_v58, %v1008_v22  ;;  %1549 = vmatprep.subr.bf16.mxu0 %v1548_v57 }
 0x8bc   :  { %1551 = vmatpush3.bf16.msra.mxu0 %v1548_v57 }
 0x8bd   :  { %v1663_v61 = vpop.eup %1662  ;;  %v1552_v7 = vpack.c.bf16 %v1030_v59, %v1029_v60 }
 0x8be   :  { %v1665_v62 = vpop.eup %1664  ;;  %v1032_v63 = vmul.f32 %v1663_v61, %v1478_v23 }
 0x8bf   :  { %v1031_v5 = vmul.f32 %v1665_v62, %v1018_v24  ;;  %1553 = vmatprep.subr.bf16.mxu0 %v1552_v7 }
 0x8c0   :  { %1555 = vmatpush3.bf16.msra.mxu0 %v1552_v7 }
 0x8c1   :  { %v1556_v19 = vpack.c.bf16 %v1032_v63, %v1031_v5 }
 0x8c3   :  { %1557 = vmatprep.subr.bf16.mxu0 %v1556_v19 }
 0x8c4   :  { %1559 = vmatpush3.bf16.msra.mxu0 %v1556_v19 }
 0x8c7   :  { %1492 = vmatmul.mubr.msk.f32.vlgmr.msra.gmra.mrb[18].mxu0 %vm453_vm3, %v1925_v35 }
 0x99a   :  { %v1493_v53 = vpop.f32.mrb[18].mxu0 }
 0x99b   :  { %v1109_v1 = vmul.f32 %v1493_v53, %v1929_v36  ;;  %v1099_v2 = vpop.f32.mrb[19].mxu0 }
 0x99c   :  { %v1108_v20 = vmul.f32 %v1099_v2, %v1931_v37 }
 0x99d   :  { %v1111_v21 = vadd.f32 %v1978_v55, %v1109_v1 }
 0x99e   :  { %v1110_v22 = vadd.f32 %v1108_v20, %v1980_v56 }
 0x99f   :  { %v1119_v23 = vadd.f32 %v1318_v3, %v1111_v21 }
 0x9a0   :  { %v1118_v24 = vadd.f32 %v1318_v3, %v1110_v22 }
 0x9a1   :  { %v1123_v29 = vmul.f32 %v1119_v23, %v1119_v23 }
 0x9a2   :  { %v1122_v30 = vmul.f32 %v1118_v24, %v1118_v24 }
 0x9a4   :  { %v1611_v31 = vpack.i.bf16 %v1123_v29, %v1122_v30 }
 0x9a6   :  { %1612 = vrot.lane.b32.xlu0 %v1611_v31, %s1698_s3 }
 0xa18   :  { %v1613_v35 = vpop.permute.xlu0 %1612 }
 0xa19   :  { %v1615_v36 = vunpack.i.h.bf16 %v1613_v35  ;;  %v1614_v4 = vunpack.i.l.bf16 %v1613_v35 }
 0xa1b   :  { %v1133_v32 = vsel %vm181_vm1, %v1119_v23, %v1615_v36  ;;  %v1132_v8 = vsel %vm181_vm1, %v1118_v24, %v1614_v4 }
 0xa1c   :  { %v1561_v11 = vpack.c.bf16 %v1133_v32, %v1132_v8 }
 0xa1e   :  { %1562 = vmatpush3.bf16.msra.mxu1 %v1561_v11 }
 0xa21   :  { %1499 = vmatmul.mubr.msk.f32.vlgmr.msra.gmra.mrb[16].mxu1 %vm333_vm2, %v1699_v0 }
 0xaf4   :  { %v1200_v37 = vpop.f32.mrb[16].mxu1 }
 0xaf5   :  { %v1204_v55 = vmul.f32 0.0625, %v1200_v37  ;;  %v1500_v56 = vpop.f32.mrb[17].mxu1 }
 0xaf7   :  { %v1205_v33 = vmul.f32 %v1204_v55, %v1204_v55  ;;  %v1215_v17 = vrot.slane %v1204_v55, %v1963_v28 }
 0xaf9   :  { %1207 = vrot.lane.b32.xlu1 %v1205_v33, %s1698_s3  ;;  %v1216_v10 = vsub.f32 %v1118_v24, %v1215_v17  ;;  %v1217_v0 = vsub.f32 %v1119_v23, %v1215_v17 }
 0xb6b   :  { %v1208_v12 = vpop.permute.xlu1 %1207 }
 0xb6c   :  { %v1210_v40 = vsub.f32 %v1204_v55, %v1208_v12 }
 0xb6e   :  { %v1211_v13 = vmax.f32 %v1210_v40, 0.0 }
 0xb70   :  { %v1218_v14 = vadd.f32 1e-05, %v1211_v13 }
 0xb72   :  { %1666 = vrsqrt.f32 %v1218_v14 }
 0xb7c   :  { %v1667_v15 = vpop.eup %1666 }
 0xb7d   :  { %v1223_v16 = vrot.slane %v1667_v15, %v1963_v28 }
 0xb7f   :  { %1225 = vrot.lane.b32.xlu0 %v1223_v16, %s1693_s5  ;;  %s1700_s5 = smov [#allocation2]  }
 0xb80   :  { %s1257_s24 = sshll.u32 %s1700_s5, 4  ;;  %s1258_s24 = int_to_ptr.vmem [resolvable:$true] %s1257_s24 }
 0xb81   :  { %s1668_s13 = scalar_lea.vmem %s1258_s24, 256  ;;  %p1673_p1 = scmp.lt.s32.totalorder %s1258_s24, %s1258_s24 }
 0xb82   :  { %p1669_p0 = scmp.ne.s32.totalorder %s1258_s24, %s1668_s13  ;;  %p1674_p2 = scmp.lt.s32.totalorder %s1668_s13, %s1668_s13 }
 0xb84   :  { %p1675_p3 = por %p1674_p2, %p1673_p1 }
 0xb86   :  { %p1676_p4 = pnand %p1675_p3, %p1669_p0 }
 0xbf1   :  { %v1226_v25 = vpop.permute.xlu0 %1225 }
 0xbf2   :  { %v1228_v26 = vmul.f32 %v1226_v25, %v1216_v10  ;;  %v1229_v27 = vmul.f32 %v1226_v25, %v1217_v0 }
 0xbf4   :  { %v1236_v42 = vmul.f32 %v1320_v18, %v1228_v26  ;;  %v1237_v43 = vmul.f32 %v1320_v18, %v1229_v27 }
 0xbf6   :  { %v1244_v44 = vadd.f32 %v1321_v41, %v1236_v42  ;;  %v1245_v45 = vadd.f32 %v1321_v41, %v1237_v43 }
 0xbf8   :  { %v1246_v28 = vadd.f32 %v1244_v44, %v1799_v6  ;;  %v1247_v46 = vadd.f32 %v1245_v45, %v1805_v9 }
 0xbfa   :  { %v1248_v47 = vmax.f32 %v1246_v28, 0.0  ;;  %v1249_v48 = vmax.f32 %v1247_v46, 0.0 }
 0xbfc   :  { %1250 = vst.msk [vmem:[#allocation2] sm:$0xff] %vm181_vm1, %v1248_v47  ;;  %1251 = vst.msk [vmem:[#allocation2 + $0x8] sm:$0xff] %vm181_vm1, %v1249_v48 }
 0xbfd   :  { %1679 = shalt.err (!%p1676_p4)
}
 0xbfe   :  { %s1680_s4 = scalar_lea.hbm %s2070_s15, 256 }
 0xbff   :  { %p1681_p5 = scmp.ne.s32.totalorder %s2070_s15, %s1680_s4  ;;  %p1684_p6 = scmp.lt.u32.totalorder %s1680_s4, %s2070_s15 }
 0xc01   :  { %p1686_p7 = pnand %p1684_p6, %p1681_p5 }
 0xc03   :  { %1689 = shalt.err (!%p1686_p7)
}
 0xc04   :  { %s1701_s6 = smov 128   ;;  %s1702_s28 = smov 8  }
 0xc05   :  { %1263 = dma.vmem_to_hbm [thread:$0]  %s1258_s24, 256, %s2070_s15, [#allocation3], %s1701_s6, %s1701_s6, %s1702_s28  }
 0xc06   :  { %1690 = dma.done.wait [#allocation3], 256  }
 0xc07   :  { %1691 = vsyncadd [#allocation3], 4294967040 }
 0xc08   :  { %1267 = vsyncpa [#allocation3], 1 }

</bundles_post_ra>
